<compile_context>
chip_gen: v5e
topology: v5e:2x2
jax: 0.10.0
libtpu: 0.0.40
codegen_flags: <defaults>
</compile_context>

<pallas_src>
import jax
import jax.numpy as jnp
from jax.experimental import pallas as pl
from jax.experimental.pallas import tpu as pltpu


# ----------------------------------------------------------------------------- helpers
def _round_up(x, m):
    return ((x + m - 1) // m) * m


def _pick_bt(B, block_b):
    """Batch-tile size.

    * B <= 512: single tile (launch-bound regime anyway).
    * B  > 512: at least two 256-aligned tiles so a "parallel" grid axis can be
      split across v7x's two TensorCores, capped at `block_b`.
    """
    if B <= 512:
        return B
    bt = min(block_b, _round_up(pl.cdiv(B, 2), 256))
    return max(256, _round_up(bt, 256))


def _vmem_params(est_bytes):
    """Raise the scoped VMEM limit only when the tile needs it (never lower it)."""
    vmem_limit = None
    if est_bytes > (12 << 20):
        vmem_limit = min(max(32 << 20, _round_up(int(est_bytes * 1.3), 1 << 20)),
                         56 << 20)   # stay under v7x's 64 MiB physical VMEM
    return pltpu.CompilerParams(dimension_semantics=("parallel",),
                                vmem_limit_bytes=vmem_limit)


# ----------------------------------------------------------------------------- batch-major kernel
def _critic_kernel(state_ref, action_ref, w1s_ref, w1a_ref, b1_ref,
                   w2_ref, b2_ref, w3_ref, b3_ref, o_ref):
    # Activations may arrive bf16-on-the-wire; all math is done in f32.
    s = state_ref[...].astype(jnp.float32)      # (Bt, Ds)
    a = action_ref[...].astype(jnp.float32)     # (Bt, Da)

    # Fused concat:  x @ W1  ==  state @ W1[:Ds] + action @ W1[Ds:]
    h1 = jnp.dot(s, w1s_ref[...], preferred_element_type=jnp.float32)
    h1 = h1 + jnp.dot(a, w1a_ref[...], preferred_element_type=jnp.float32)
    h1 = jnp.maximum(h1 + b1_ref[...], 0.0)     # (Bt, H)

    h2 = jnp.dot(h1, w2_ref[...], preferred_element_type=jnp.float32)
    h2 = jnp.maximum(h2 + b2_ref[...], 0.0)     # (Bt, H)

    # Final Linear(H, 1) as a transposed GEMV: (1,H) . (Bt,H)^T -> (1, Bt).
    # Lane-dense result -> unmasked dense store.
    out_row = jnp.einsum('oh,bh->ob', w3_ref[...], h2,
                         preferred_element_type=jnp.float32)   # (1, Bt)
    o_ref[...] = (out_row + b3_ref[0]).astype(o_ref.dtype)


def critic_forward(state, action, params, *, block_b=8192, activation_dtype=None):
    """state: (B, Ds), action: (B, Da). Returns (B, 1) critic value."""
    w1s, w1a, b1, w2, b2, w3, b3 = params
    B, Ds = state.shape
    Da = action.shape[1]
    H = w1s.shape[1]
    F = Ds + Da

    if activation_dtype is not None:
        # bf16 on the wire: halves activation HBM traffic; math stays f32.
        state = state.astype(activation_dtype)
        action = action.astype(activation_dtype)

    bt = _pick_bt(B, block_b)
    num_tiles = pl.cdiv(B, bt)          # partial boundary block instead of jnp.pad

    # VMEM estimate (lane-padded to 128) for the double-buffered pipeline.
    k = state.dtype.itemsize
    est = (4 * _round_up(bt, 8) * 128 * k        # state + action tiles, double-buffered
           + 2 * _round_up(bt, 8) * 128 * 4      # h1 / h2 f32 intermediates
           + 2 * 8 * _round_up(bt, 128) * 4      # (1, bt) output row, double-buffered
           + (1 << 20))                          # weights + compiler scratch slack
    compiler_params = _vmem_params(est)

    act_bytes = state.size * state.dtype.itemsize + action.size * action.dtype.itemsize
    w_bytes = sum(int(p.size) * p.dtype.itemsize for p in params)
    cost = pl.CostEstimate(
        flops=2 * B * (F * H + H * H + H),
        transcendentals=0,
        bytes_accessed=act_bytes + w_bytes + B * 4,
    )

    out_row = pl.pallas_call(
        _critic_kernel,
        out_shape=jax.ShapeDtypeStruct((1, B), jnp.float32),
        grid=(num_tiles,),
        in_specs=[
            pl.BlockSpec((bt, Ds), lambda i: (i, 0)),            # state tile
            pl.BlockSpec((bt, Da), lambda i: (i, 0)),            # action tile
            pl.BlockSpec((Ds, H), lambda i: (0, 0)),             # W1[:Ds]  (resident)
            pl.BlockSpec((Da, H), lambda i: (0, 0)),             # W1[Ds:]  (resident)
            pl.BlockSpec((1, H), lambda i: (0, 0)),              # b1
            pl.BlockSpec((H, H), lambda i: (0, 0)),              # W2
            pl.BlockSpec((1, H), lambda i: (0, 0)),              # b2
            pl.BlockSpec((1, H), lambda i: (0, 0)),              # W3 row
            pl.BlockSpec(memory_space=pltpu.MemorySpace.SMEM),   # b3 scalar
        ],
        out_specs=pl.BlockSpec((1, bt), lambda i: (0, i)),       # lane-dense row
        compiler_params=compiler_params,
        cost_estimate=cost,
    )(state, action, w1s, w1a, b1, w2, b2, w3, b3)

    return out_row[0, :B].reshape(B, 1)


# ----------------------------------------------------------------------------- feature-major kernel
def _critic_kernel_fm(state_ref, action_ref, w1s_ref, w1a_ref, b1_ref,
                      w2_ref, b2_ref, w3_ref, b3_ref, o_ref):
    s = state_ref[...].astype(jnp.float32)      # (Ds, Bt)
    a = action_ref[...].astype(jnp.float32)     # (Da, Bt)

    # Weights are supplied in (out, in) layout; every op below is lane-dense in Bt.
    h1 = jnp.dot(w1s_ref[...], s, preferred_element_type=jnp.float32)
    h1 = h1 + jnp.dot(w1a_ref[...], a, preferred_element_type=jnp.float32)
    h1 = jnp.maximum(h1 + b1_ref[...], 0.0)     # (H, Bt)

    h2 = jnp.dot(w2_ref[...], h1, preferred_element_type=jnp.float32)
    h2 = jnp.maximum(h2 + b2_ref[...], 0.0)     # (H, Bt)

    out_row = jnp.dot(w3_ref[...], h2, preferred_element_type=jnp.float32)  # (1, Bt)
    o_ref[...] = (out_row + b3_ref[0]).astype(o_ref.dtype)


def critic_forward_feature_major(state_t, action_t, params, *,
                                 block_b=16384, activation_dtype=None):
    """Feature-major entry point: state_t: (Ds, B), action_t: (Da, B) -> (B, 1).

    Use when the caller can supply (or fuse upstream) feature-major activations:
    no lane-padding of the small feature dims and no per-step h2 relayout.
    """
    w1s, w1a, b1, w2, b2, w3, b3 = params
    Ds, B = state_t.shape
    Da = action_t.shape[0]
    H = w1s.shape[1]
    F = Ds + Da

    if activation_dtype is not None:
        state_t = state_t.astype(activation_dtype)
        action_t = action_t.astype(activation_dtype)

    # Tiny one-time re-layout of the resident weights/biases (<=64x64 each).
    w1s_t, w1a_t, w2_t = w1s.T, w1a.T, w2.T                 # (H, in)
    b1_c, b2_c = b1.reshape(H, 1), b2.reshape(H, 1)         # column biases

    bt = _pick_bt(B, block_b)
    num_tiles = pl.cdiv(B, bt)

    k = state_t.dtype.itemsize
    est = (2 * (_round_up(Ds, 8) + _round_up(Da, 8)) * _round_up(bt, 128) * k
           + 2 * H * _round_up(bt, 128) * 4                 # h1 / h2
           + 2 * 8 * _round_up(bt, 128) * 4                 # (1, bt) output row
           + (1 << 20))
    compiler_params = _vmem_params(est)

    cost = pl.CostEstimate(
        flops=2 * B * (F * H + H * H + H),
        transcendentals=0,
        bytes_accessed=(state_t.size * k + action_t.size * k
                        + sum(int(p.size) * p.dtype.itemsize for p in params) + B * 4),
    )

    out_row = pl.pallas_call(
        _critic_kernel_fm,
        out_shape=jax.ShapeDtypeStruct((1, B), jnp.float32),
        grid=(num_tiles,),
        in_specs=[
            pl.BlockSpec((Ds, bt), lambda i: (0, i)),            # state tile (feature-major)
            pl.BlockSpec((Da, bt), lambda i: (0, i)),            # action tile
            pl.BlockSpec((H, Ds), lambda i: (0, 0)),             # W1_s^T (resident)
            pl.BlockSpec((H, Da), lambda i: (0, 0)),             # W1_a^T (resident)
            pl.BlockSpec((H, 1), lambda i: (0, 0)),              # b1 column
            pl.BlockSpec((H, H), lambda i: (0, 0)),              # W2^T
            pl.BlockSpec((H, 1), lambda i: (0, 0)),              # b2 column
            pl.BlockSpec((1, H), lambda i: (0, 0)),              # W3 row
            pl.BlockSpec(memory_space=pltpu.MemorySpace.SMEM),   # b3 scalar
        ],
        out_specs=pl.BlockSpec((1, bt), lambda i: (0, i)),
        compiler_params=compiler_params,
        cost_estimate=cost,
    )(state_t, action_t, w1s_t, w1a_t, b1_c, w2_t, b2_c, w3, b3)

    return out_row[0, :B].reshape(B, 1)


# ----------------------------------------------------------------------------- params & reference
def init_critic_params(key, ds, da, hidden=64):
    """Matches nn.Linear default init U(-1/sqrt(fan_in), +1/sqrt(fan_in)).

    W1 is generated for the full concatenated input and split into the
    state/action blocks so that  state @ W1_s + action @ W1_a == concat @ W1.
    """
    def linear(key, fan_in, fan_out):
        kw, kb = jax.random.split(key)
        bound = 1.0 / jnp.sqrt(jnp.float32(fan_in))
        # stored as (in, out) == transpose of torch's (out, in) weight
        w = jax.random.uniform(kw, (fan_in, fan_out), jnp.float32, -bound, bound)
        b = jax.random.uniform(kb, (1, fan_out), jnp.float32, -bound, bound)
        return w, b

    k1, k2, k3 = jax.random.split(key, 3)
    w1, b1 = linear(k1, ds + da, hidden)
    w2, b2 = linear(k2, hidden, hidden)
    w3, b3 = linear(k3, hidden, 1)
    return (w1[:ds], w1[ds:], b1, w2, b2,
            w3.reshape(1, hidden),        # W3 as a (1, H) row
            b3.reshape(1))                # b3 as a flat scalar (SMEM)


def critic_reference(state, action, params):
    """Pure-JAX reference for correctness check."""
    w1s, w1a, b1, w2, b2, w3, b3 = params
    x = jnp.concatenate([state, action], axis=1).astype(jnp.float32)
    w1 = jnp.concatenate([w1s, w1a], axis=0)
    h1 = jnp.maximum(x @ w1 + b1, 0.0)
    h2 = jnp.maximum(h1 @ w2 + b2, 0.0)
    return h2 @ w3.T + b3.reshape(1, 1)


# ----------------------------------------------------------------------------- tests
if __name__ == "__main__":
    key = jax.random.PRNGKey(0)
    k_state, k_action, k_params = jax.random.split(key, 3)

    # in_features = Ds + Da = 32, hidden = 64.
    B, Ds, Da = 8, 24, 8
    state = jax.random.normal(k_state, (B, Ds), jnp.float32)
    action = jax.random.normal(k_action, (B, Da), jnp.float32)
    params = init_critic_params(k_params, Ds, Da, hidden=64)

    # 1) Small-batch, single-tile f32 path (exact semantics of the PyTorch module).
    out = jax.block_until_ready(critic_forward(state, action, params))
    ref = critic_reference(state, action, params)
    assert out.shape == (B, 1), out.shape
    assert jnp.allclose(out, ref, atol=1e-4, rtol=1e-4)

    # 2) Multi-tile path with a PARTIAL boundary block (no jnp.pad):
    #    B=600, bt=256 -> grid=(3,), last tile holds 88 valid rows.
    B2 = 600
    state2 = jax.random.normal(k_state, (B2, Ds), jnp.float32)
    action2 = jax.random.normal(k_action, (B2, Da), jnp.float32)
    out2 = jax.block_until_ready(
        critic_forward(state2, action2, params, block_b=256))
    ref2 = critic_reference(state2, action2, params)
    assert out2.shape == (B2, 1), out2.shape
    assert jnp.allclose(out2, ref2, atol=1e-4, rtol=1e-4)

    # 3) Feature-major path (caller supplies (Ds,B)/(Da,B)); lane-dense everywhere.
    out3 = jax.block_until_ready(
        critic_forward_feature_major(state2.T, action2.T, params, block_b=256))
    assert out3.shape == (B2, 1), out3.shape
    assert jnp.allclose(out3, ref2, atol=1e-4, rtol=1e-4)

    # 4) bf16-on-the-wire activations (opt-in; math still f32 in-kernel).
    out4 = jax.block_until_ready(
        critic_forward(state2, action2, params, block_b=256,
                       activation_dtype=jnp.bfloat16))
    ref4 = critic_reference(state2.astype(jnp.bfloat16).astype(jnp.float32),
                            action2.astype(jnp.bfloat16).astype(jnp.float32),
                            params)
    assert jnp.allclose(out4, ref4, atol=1e-3, rtol=1e-3)

    print("KERNEL_OK")
</pallas_src>

<mosaic_0001>
module attributes {stable_mosaic.version = 11 : i64} {
  func.func @_critic_kernel(%arg0: i32, %arg1: memref<8x24xf32, #tpu.memory_space<vmem>>, %arg2: memref<8x8xf32, #tpu.memory_space<vmem>>, %arg3: memref<24x64xf32, #tpu.memory_space<vmem>>, %arg4: memref<8x64xf32, #tpu.memory_space<vmem>>, %arg5: memref<1x64xf32, #tpu.memory_space<vmem>>, %arg6: memref<64x64xf32, #tpu.memory_space<vmem>>, %arg7: memref<1x64xf32, #tpu.memory_space<vmem>>, %arg8: memref<1x64xf32, #tpu.memory_space<vmem>>, %arg9: memref<1xf32, #tpu.memory_space<smem>>, %arg10: memref<1x8xf32, #tpu.memory_space<vmem>>) attributes {dimension_semantics = [#tpu.dimension_semantics<parallel>], iteration_bounds = array<i64: 1>, scalar_prefetch = 0 : i64, scratch_operands = 0 : i64, tpu.core_type = #tpu.core_type<tc>, window_params = [{transform_indices = @transform_0, window_bounds = array<i64: 8, 24>}, {transform_indices = @transform_1, window_bounds = array<i64: 8, 8>}, {pipeline_mode = #tpu.pipeline_mode<synchronous>, transform_indices = @transform_2, window_bounds = array<i64: 24, 64>}, {pipeline_mode = #tpu.pipeline_mode<synchronous>, transform_indices = @transform_3, window_bounds = array<i64: 8, 64>}, {pipeline_mode = #tpu.pipeline_mode<synchronous>, transform_indices = @transform_4, window_bounds = array<i64: 1, 64>}, {pipeline_mode = #tpu.pipeline_mode<synchronous>, transform_indices = @transform_5, window_bounds = array<i64: 64, 64>}, {pipeline_mode = #tpu.pipeline_mode<synchronous>, transform_indices = @transform_6, window_bounds = array<i64: 1, 64>}, {pipeline_mode = #tpu.pipeline_mode<synchronous>, transform_indices = @transform_7, window_bounds = array<i64: 1, 64>}, {transform_indices = @transform_8, window_bounds = array<i64: 1>}, {transform_indices = @transform_9, window_bounds = array<i64: 1, 8>}]} {
    %c0 = arith.constant 0 : index
    %c0_0 = arith.constant 0 : index
    %0 = vector.load %arg1[%c0, %c0_0] : memref<8x24xf32, #tpu.memory_space<vmem>>, vector<8x24xf32>
    %c0_1 = arith.constant 0 : index
    %c0_2 = arith.constant 0 : index
    %1 = vector.load %arg2[%c0_1, %c0_2] : memref<8x8xf32, #tpu.memory_space<vmem>>, vector<8x8xf32>
    %c0_3 = arith.constant 0 : index
    %c0_4 = arith.constant 0 : index
    %2 = vector.load %arg3[%c0_3, %c0_4] : memref<24x64xf32, #tpu.memory_space<vmem>>, vector<24x64xf32>
    %cst = arith.constant dense<0.000000e+00> : vector<8x64xf32>
    %3 = tpu.matmul %0, %2, %cst {dimension_numbers = #tpu.dot_dimension_numbers<[1], [0], [0], [1], [0, 0, 1, 1], [], []>} : vector<8x24xf32>, vector<24x64xf32>, vector<8x64xf32> -> vector<8x64xf32>
    %c0_5 = arith.constant 0 : index
    %c0_6 = arith.constant 0 : index
    %4 = vector.load %arg4[%c0_5, %c0_6] : memref<8x64xf32, #tpu.memory_space<vmem>>, vector<8x64xf32>
    %cst_7 = arith.constant dense<0.000000e+00> : vector<8x64xf32>
    %5 = tpu.matmul %1, %4, %cst_7 {dimension_numbers = #tpu.dot_dimension_numbers<[1], [0], [0], [1], [0, 0, 1, 1], [], []>} : vector<8x8xf32>, vector<8x64xf32>, vector<8x64xf32> -> vector<8x64xf32>
    %6 = arith.addf %3, %5 : vector<8x64xf32>
    %c0_8 = arith.constant 0 : index
    %c0_9 = arith.constant 0 : index
    %7 = vector.load %arg5[%c0_8, %c0_9] : memref<1x64xf32, #tpu.memory_space<vmem>>, vector<1x64xf32>
    %8 = vector.broadcast %7 : vector<1x64xf32> to vector<8x64xf32>
    %9 = arith.addf %6, %8 : vector<8x64xf32>
    %cst_10 = arith.constant 0.000000e+00 : f32
    %10 = vector.broadcast %cst_10 : f32 to vector<8x64xf32>
    %11 = arith.maximumf %9, %10 : vector<8x64xf32>
    %c0_11 = arith.constant 0 : index
    %c0_12 = arith.constant 0 : index
    %12 = vector.load %arg6[%c0_11, %c0_12] : memref<64x64xf32, #tpu.memory_space<vmem>>, vector<64x64xf32>
    %cst_13 = arith.constant dense<0.000000e+00> : vector<8x64xf32>
    %13 = tpu.matmul %11, %12, %cst_13 {dimension_numbers = #tpu.dot_dimension_numbers<[1], [0], [0], [1], [0, 0, 1, 1], [], []>} : vector<8x64xf32>, vector<64x64xf32>, vector<8x64xf32> -> vector<8x64xf32>
    %c0_14 = arith.constant 0 : index
    %c0_15 = arith.constant 0 : index
    %14 = vector.load %arg7[%c0_14, %c0_15] : memref<1x64xf32, #tpu.memory_space<vmem>>, vector<1x64xf32>
    %15 = vector.broadcast %14 : vector<1x64xf32> to vector<8x64xf32>
    %16 = arith.addf %13, %15 : vector<8x64xf32>
    %cst_16 = arith.constant 0.000000e+00 : f32
    %17 = vector.broadcast %cst_16 : f32 to vector<8x64xf32>
    %18 = arith.maximumf %16, %17 : vector<8x64xf32>
    %c0_17 = arith.constant 0 : index
    %c0_18 = arith.constant 0 : index
    %19 = vector.load %arg8[%c0_17, %c0_18] : memref<1x64xf32, #tpu.memory_space<vmem>>, vector<1x64xf32>
    "tpu.trace_start"() <{level = 10 : i32, message = "oh,bh->ob"}> : () -> ()
    %cst_19 = arith.constant dense<0.000000e+00> : vector<1x8xf32>
    %20 = tpu.matmul %19, %18, %cst_19 {dimension_numbers = #tpu.dot_dimension_numbers<[1], [1], [0], [0], [0, 0, 1, 0], [], []>} : vector<1x64xf32>, vector<8x64xf32>, vector<1x8xf32> -> vector<1x8xf32>
    "tpu.trace_stop"() : () -> ()
    %c0_20 = arith.constant 0 : index
    %21 = memref.load %arg9[%c0_20] : memref<1xf32, #tpu.memory_space<smem>>
    %22 = vector.broadcast %21 : f32 to vector<1x8xf32>
    %23 = arith.addf %20, %22 : vector<1x8xf32>
    %c0_21 = arith.constant 0 : index
    %c0_22 = arith.constant 0 : index
    %24 = vector.load %arg10[%c0_21, %c0_22] : memref<1x8xf32, #tpu.memory_space<vmem>>, vector<1x8xf32>
    tpu.vector_store %arg10[%c0_21, %c0_22], %23 {strides = array<i32>} : memref<1x8xf32, #tpu.memory_space<vmem>>, vector<1x8xf32>,
    return
  }
  func.func @transform_0(%arg0: i32) -> (i32, i32) {
    %c0_i32 = arith.constant 0 : i32
    %c0_i32_0 = arith.constant 0 : i32
    return %arg0, %c0_i32 : i32, i32
  }
  func.func @transform_1(%arg0: i32) -> (i32, i32) {
    %c0_i32 = arith.constant 0 : i32
    %c0_i32_0 = arith.constant 0 : i32
    return %arg0, %c0_i32 : i32, i32
  }
  func.func @transform_2(%arg0: i32) -> (i32, i32) {
    %c0_i32 = arith.constant 0 : i32
    %c0_i32_0 = arith.constant 0 : i32
    %c0_i32_1 = arith.constant 0 : i32
    return %c0_i32, %c0_i32_0 : i32, i32
  }
  func.func @transform_3(%arg0: i32) -> (i32, i32) {
    %c0_i32 = arith.constant 0 : i32
    %c0_i32_0 = arith.constant 0 : i32
    %c0_i32_1 = arith.constant 0 : i32
    return %c0_i32, %c0_i32_0 : i32, i32
  }
  func.func @transform_4(%arg0: i32) -> (i32, i32) {
    %c0_i32 = arith.constant 0 : i32
    %c0_i32_0 = arith.constant 0 : i32
    %c0_i32_1 = arith.constant 0 : i32
    return %c0_i32, %c0_i32_0 : i32, i32
  }
  func.func @transform_5(%arg0: i32) -> (i32, i32) {
    %c0_i32 = arith.constant 0 : i32
    %c0_i32_0 = arith.constant 0 : i32
    %c0_i32_1 = arith.constant 0 : i32
    return %c0_i32, %c0_i32_0 : i32, i32
  }
  func.func @transform_6(%arg0: i32) -> (i32, i32) {
    %c0_i32 = arith.constant 0 : i32
    %c0_i32_0 = arith.constant 0 : i32
    %c0_i32_1 = arith.constant 0 : i32
    return %c0_i32, %c0_i32_0 : i32, i32
  }
  func.func @transform_7(%arg0: i32) -> (i32, i32) {
    %c0_i32 = arith.constant 0 : i32
    %c0_i32_0 = arith.constant 0 : i32
    %c0_i32_1 = arith.constant 0 : i32
    return %c0_i32, %c0_i32_0 : i32, i32
  }
  func.func @transform_8(%arg0: i32) -> i32 {
    %c0_i32 = arith.constant 0 : i32
    %c0_i32_0 = arith.constant 0 : i32
    return %c0_i32 : i32
  }
  func.func @transform_9(%arg0: i32) -> (i32, i32) {
    %c0_i32 = arith.constant 0 : i32
    %c0_i32_0 = arith.constant 0 : i32
    return %c0_i32, %arg0 : i32, i32
  }
}

</mosaic_0001>

<bundles_post_ra>
// kernel: tpu_custom_call.1
= control target key start
LH: loop header
LB: loop body
LE: loop exit
PB: predicated region body
PF: predicated region fallthrough
CT: control target
= control target key end

     0   :  { %15 = vsyncpa [#allocation4], 0  ;;  %s508_s0 = inlined_call_operand.hbm [shape: f32[8,24], index: 0, kind: input, shape index: {}]   ;;  %s509_s1 = inlined_call_operand.hbm [shape: f32[8,8], index: 1, kind: input, shape index: {}]   ;;  %s510_s2 = inlined_call_operand.hbm [shape: f32[24,64], index: 2, kind: input, shape index: {}]   ;;  %s511_s3 = inlined_call_operand.hbm [shape: f32[8,64], index: 3, kind: input, shape index: {}]   ;;  %s512_s4 = inlined_call_operand.vmem [shape: f32[1,64], index: 4, kind: input, shape index: {}]   ;;  %s513_s5 = inlined_call_operand.hbm [shape: f32[64,64], index: 5, kind: input, shape index: {}]   ;;  %s514_s6 = inlined_call_operand.vmem [shape: f32[1,64], index: 6, kind: input, shape index: {}]   ;;  %s515_s7 = inlined_call_operand.vmem [shape: f32[1,64], index: 7, kind: input, shape index: {}]   ;;  %s516_s8 = inlined_call_operand.<no memory space> [shape: f32[1], index: 8, kind: input, shape index: {}]   ;;  %s517_s9 = inlined_call_operand.hbm [shape: f32[1,8], index: 9, kind: output, shape index: {}]  }
   0x1   :  { %16 = vsyncpa [#allocation7], 0 }
   0x2   :  { %17 = vsyncpa [#allocation10], 0  ;;  %s35_s11 = sshll.u32 %s509_s1, 4  ;;  %s36_s11 = int_to_ptr.hbm [resolvable:$true] %s35_s11 }
   0x3   :  { %18 = vsyncpa [#allocation5], 0  ;;  %s420_s12 = smov [#allocation6]   ;;  %s59_s16 = sshll.u32 %s511_s3, 4  ;;  %s60_s16 = int_to_ptr.hbm [resolvable:$true] %s59_s16 }
   0x4   :  { %s37_s13 = sshll.u32 %s420_s12, 4  ;;  %s421_s17 = smov [#allocation9]   ;;  %s38_s13 = int_to_ptr.vmem [resolvable:$true] %s37_s13 }
   0x5   :  { %40 = dma.hbm_to_vmem [thread:$0]  %s36_s11, 128, %s38_s13, [#allocation7]  }
   0x6   :  { %s61_s18 = sshll.u32 %s421_s17, 4  ;;  %s24_s21 = sshll.u32 %s508_s0, 4  ;;  %s62_s18 = int_to_ptr.vmem [resolvable:$true] %s61_s18  ;;  %s25_s21 = int_to_ptr.hbm [resolvable:$true] %s24_s21 }
   0x7   :  { %64 = dma.hbm_to_vmem [thread:$0]  %s60_s16, 128, %s62_s18, [#allocation10]  }
   0x8   :  { %s45_s23 = sshll.u32 %s510_s2, 4  ;;  %s422_s24 = smov [#allocation3]   ;;  %s46_s23 = int_to_ptr.hbm [resolvable:$true] %s45_s23 }
   0x9   :  { %s26_s25 = sshll.u32 %s422_s24, 4  ;;  %s423_s3 = smov [#allocation8]   ;;  %s27_s25 = int_to_ptr.vmem [resolvable:$true] %s26_s25 }
   0xa   :  { %29 = dma.hbm_to_vmem [thread:$0]  %s25_s21, 128, %s27_s25, [#allocation4]  }
   0xb   :  { %s47_s26 = sshll.u32 %s423_s3, 4  ;;  %s424_s27 = smov 128   ;;  %s48_s26 = int_to_ptr.vmem [resolvable:$true] %s47_s26 }
   0xc   :  { %s425_s28 = smov 8   ;;  %s71_s30 = sshll.u32 %s513_s5, 4  ;;  %s72_s30 = int_to_ptr.hbm [resolvable:$true] %s71_s30 }
   0xd   :  { %53 = dma.hbm_to_vmem [thread:$0]  %s46_s23, 384, %s48_s26, [#allocation7], %s424_s27, %s424_s27, %s425_s28  }
   0xe   :  { %s426_s10 = smov [#allocation11]  }
   0xf   :  { %s73_s11 = sshll.u32 %s426_s10, 4  ;;  %s74_s11 = int_to_ptr.vmem [resolvable:$true] %s73_s11 }
  0x10   :  { %79 = dma.hbm_to_vmem [thread:$0]  %s72_s30, 1024, %s74_s11, [#allocation10], %s424_s27, %s424_s27, %s425_s28  }
  0x11   :  { %412 = dma.done.wait [#allocation4], 128  }
  0x12   :  { %413 = vsyncadd [#allocation4], 4294967168 }
  0x13   :  { %414 = dma.done.wait [#allocation7], 512  }
  0x14   :  { %415 = vsyncadd [#allocation7], 4294966784 }
  0x15   :  { %416 = dma.done.wait [#allocation10], 1152  }
  0x16   :  { %417 = vsyncadd [#allocation10], 4294966144  ;;  %vm112_vm0 = vcmask 64512   ;;  %v110_v0 = vld [vmem:[#allocation8 + $0x10] sm:$0xff]  ;;  %v109_v1 = vld [vmem:[#allocation8 + $0x8] sm:$0xff]  ;;  %vm136_vm1 = vcmask 195584   ;;  %v205_v25 = vstv %s516_s8 }
  0x17   :  { %v111_v2 = vld [vmem:[#allocation9] sm:$0xff]  ;;  %153 = vmatpush.msra.mxu1 %v110_v0  ;;  %v108_v4 = vld [vmem:[#allocation8] sm:$0xff]  ;;  %v172_v6 = vld [vmem:[#allocation11 + $0x30] sm:$0xff]  ;;  %vm178_vm2 = vcmask 523264   ;;  %s427_s17 = smov [#allocation12]   ;;  %s241_s21 = sshll.u32 %s517_s9, 4  ;;  %s242_s21 = int_to_ptr.hbm [resolvable:$true] %s241_s21 }
  0x18   :  { %131 = vmatpush.msra.mxu0 %v111_v2  ;;  %v107_v3 = vld [vmem:[#allocation6] sm:$0xff]  ;;  %v106_v7 = vld [vmem:[#allocation3] sm:$0xff]  ;;  %v171_v8 = vld [vmem:[#allocation11 + $0x28] sm:$0xff]  ;;  %s239_s18 = sshll.u32 %s427_s17, 4  ;;  %vm232_vm3 = vcmask 57344   ;;  %s240_s18 = int_to_ptr.vmem [resolvable:$true] %s239_s18 }
  0x19   :  { %253 = vmatmul.msk.f32.vlgmr.msra.gmra.mxu0 %vm112_vm0, %v107_v3  ;;  %v173_v5 = vld [vmem:[#allocation11 + $0x38] sm:$0xff]  ;;  %154 = vmatpush.msra.mxu1 %v109_v1  ;;  %v170_v9 = vld [vmem:[#allocation11 + $0x20] sm:$0xff]  ;;  %v168_v11 = vld [vmem:[#allocation11 + $0x10] sm:$0xff] }
  0x1a   :  { %190 = vmatpush.msra.mxu2 %v173_v5  ;;  %v169_v10 = vld [vmem:[#allocation11 + $0x18] sm:$0xff]  ;;  %v167_v12 = vld [vmem:[#allocation11 + $0x8] sm:$0xff]  ;;  %v166_v13 = vld [vmem:[#allocation11] sm:$0xff] }
  0x1b   :  { %155 = vmatpush.msra.mxu1 %v108_v4  ;;  %v266_v15 = vld [vmem:[%s512_s4] ss:$0 sm:$0xff] }
  0x1c   :  { %191 = vmatpush.msra.mxu2 %v172_v6  ;;  %254 = vmatmul.msk.f32.vlgmr.msra.gmra.mxu1 %vm136_vm1, %v106_v7  ;;  %v267_v20 = vld [vmem:[%s514_s6] ss:$0 sm:$0xff] }
  0x1d   :  { %v203_v24 = vld [vmem:[%s515_s7] sm:$0x1] }
  0x1e   :  { %192 = vmatpush.msra.mxu2 %v171_v8 }
  0x20   :  { %193 = vmatpush.msra.mxu2 %v170_v9 }
  0x22   :  { %194 = vmatpush.msra.mxu2 %v169_v10 }
  0x24   :  { %195 = vmatpush.msra.mxu2 %v168_v11 }
  0x26   :  { %196 = vmatpush.msra.mxu2 %v167_v12 }
  0x28   :  { %197 = vmatpush.msra.mxu2 %v166_v13 }
  0x96   :  { %v133_v14 = vpop.f32.mrf.mxu0 }
  0x99   :  { %v157_v16 = vpop.f32.mrf.mxu1 }
  0x9a   :  { %v158_v17 = vadd.f32 %v157_v16, %v133_v14 }
  0x9c   :  { %v164_v18 = vadd.f32 %v266_v15, %v158_v17 }
  0x9e   :  { %v165_v19 = vmax.f32 %v164_v18, 0.0 }
  0xa0   :  { %255 = vmatmul.msk.f32.vlgmr.msra.gmra.mxu2 %vm178_vm2, %v165_v19 }
 0x123   :  { %v199_v21 = vpop.f32.mrf.mxu2 }
 0x124   :  { %v200_v22 = vadd.f32 %v267_v20, %v199_v21 }
 0x126   :  { %v202_v23 = vmax.f32 %v200_v22, 0.0 }
 0x128   :  { %256 = vmatpush.xpose.msk.msra.mxu3 %vm178_vm2, %v202_v23 }
 0x12b   :  { %257 = vmatmul.msk.f32.vlgmr.msra.gmra.mxu3 %vm178_vm2, %v203_v24 }
 0x1ae   :  { %v229_v26 = vpop.f32.mrf.mxu3 }
 0x1af   :  { %v230_v27 = vadd.f32 %v229_v26, %v205_v25 }
 0x1b1   :  { %233 = vst.msk [vmem:[#allocation12] sm:$0x1] %vm232_vm3, %v230_v27 }
 0x1b2   :  { %244 = dma.vmem_to_hbm [thread:$0]  %s240_s18, 16, %s242_s21, [#allocation5]  }
 0x1b3   :  { %418 = dma.done.wait [#allocation5], 16  }
 0x1b4   :  { %419 = vsyncadd [#allocation5], 4294967280 }
 0x1b5   :  { %249 = vsyncpa [#allocation4], 1 }
 0x1b6   :  { %250 = vsyncpa [#allocation7], 1 }
 0x1b7   :  { %251 = vsyncpa [#allocation10], 1 }
 0x1b8   :  { %252 = vsyncpa [#allocation5], 1 }

</bundles_post_ra>
